<compile_context>
chip_gen: v5e
topology: v5e:2x2
jax: 0.10.0
libtpu: 0.0.40
codegen_flags: <defaults>
</compile_context>

<pallas_src>
import functools

import jax
import jax.numpy as jnp
from jax import lax
from jax.experimental import pallas as pl
from jax.experimental.pallas import tpu as pltpu


def _round_up(x, m):
    return (x + m - 1) // m * m


def _fold_lanes_to_128(x):
    """(B, C) with C a multiple of 128 -> (B, 128): pairwise-tree sum of the
    128-lane slices (log-depth, fills the 4 VALU slots; no cross-lane ops)."""
    n = x.shape[1] // 128
    parts = [x[:, i * 128:(i + 1) * 128] for i in range(n)]
    while len(parts) > 1:
        nxt = [parts[i] + parts[i + 1] for i in range(0, len(parts) - 1, 2)]
        if len(parts) % 2:
            nxt.append(parts[-1])
        parts = nxt
    return parts[0]


def _dpsh_partial_kernel(lhs_ref, wt_ref, out_ref, *, B, num_train, tile_n,
                         chunk, mask_tail):
    """One num_train tile -> lane-dense (1, B, 128) partial sum of the
    likelihood loss.  lhs_ref: (2B, K) block-diag [0.5*u | 0 ; 0 | y];
    wt_ref: (K, tile_n) slice of the combined [U.T ; Y.T] state."""
    lhs = lhs_ref[...]                              # (2B, K), state dtype

    if mask_tail:
        tile_base = pl.program_id(0) * tile_n       # scalar
        col = lax.broadcasted_iota(jnp.int32, (B, chunk), 1)   # hoisted

    n_chunks = tile_n // chunk
    part = None
    for c in range(n_chunks):                       # static chunk loop
        c0 = c * chunk
        w = wt_ref[:, c0:c0 + chunk]                # (K, chunk) static slice
        # Single MXU issue yields both terms (f32 accumulation).
        o = jnp.dot(lhs, w, preferred_element_type=jnp.float32)   # (2B, chunk)
        ip = o[0:B, :]                              # = 0.5 * u @ U.T (scaled LHS)
        s = (o[B:2 * B, :] > 0.0).astype(jnp.float32)
        # softplus(-|ip|) + relu(ip) - s*ip   (log1p for precision)
        ll = jnp.log1p(jnp.exp(-jnp.abs(ip))) + jnp.maximum(ip, 0.0) - s * ip
        if mask_tail:
            # Zero every overhang column BEFORE folding (tile may read past
            # num_train; garbage must not reach the sum).
            ll = jnp.where(tile_base + c0 + col < num_train, ll, 0.0)
        folded = _fold_lanes_to_128(ll)
        part = folded if part is None else part + folded

    out_ref[...] = part.reshape(1, B, 128)


def init_dpsh_state(num_train, bit, n_class, dtype=jnp.bfloat16):
    """Persistent DPSH state, transposed & combined:
       rows [0, bit)            = U.T   (bit, num_train)
       rows [bit, bit+n_class)  = Y.T   (n_class, num_train)
    bfloat16 by default (exact for binary labels; halves HBM traffic)."""
    return jnp.zeros((bit + n_class, num_train), dtype)


@functools.partial(jax.jit, static_argnames=("alpha", "tile_n"),
                   donate_argnums=(3,))
def dpsh_loss(u, y, ind, W_t, *, alpha, tile_n=32768):
    """DPSH forward.  W_t is the combined transposed state from
    init_dpsh_state (donated -> in-place scatter).  Returns (loss, W_t_new).
    Mirrors DPSHLoss.forward."""
    u = u.astype(jnp.float32)
    y = y.astype(jnp.float32)
    B, bit = u.shape
    n_class = y.shape[1]
    K, num_train = W_t.shape
    if K != bit + n_class:
        raise ValueError("W_t must have bit + n_class rows")
    state_dtype = W_t.dtype

    # In-place (donated) scatter of this batch's columns: U[ind]=u, Y[ind]=y.
    cols = jnp.concatenate([u, y], axis=1).T.astype(state_dtype)    # (K, B)
    W_t = W_t.at[:, ind].set(cols)

    # --- tile sizing ------------------------------------------------------
    tile_n = max(128, min(int(tile_n), _round_up(num_train, 128)))
    # Keep >= 8 grid steps when possible: splits across both v7x TensorCores
    # and keeps the double-buffered pipeline busy (no-op cost on v5e/v6e).
    tile_n = min(tile_n, max(128, _round_up(pl.cdiv(num_train, 8), 128)))
    tile_n = _round_up(tile_n, 128)
    n_tiles = pl.cdiv(num_train, tile_n)
    chunk = next(c for c in (512, 384, 256, 128) if tile_n % c == 0)
    mask_tail = (num_train % tile_n) != 0       # tail-only; skipped if divisible

    # Tiny block-diagonal LHS: one dot per chunk produces both ip and s-preact.
    # (0.5 folded into the u rows: exact power-of-two scale, free here.)
    lhs = jnp.zeros((2 * B, K), jnp.float32)
    lhs = lhs.at[:B, :bit].set(0.5 * u)
    lhs = lhs.at[B:, bit:].set(y)
    lhs = lhs.astype(state_dtype)

    state_bytes = K * num_train * W_t.dtype.itemsize
    cost = pl.CostEstimate(
        flops=2 * (2 * B) * K * num_train + 8 * B * num_train,
        transcendentals=2 * B * num_train,
        bytes_accessed=state_bytes + lhs.size * lhs.dtype.itemsize
                       + n_tiles * B * 128 * 4)

    tile_bytes = K * tile_n * W_t.dtype.itemsize
    # Double-buffered state stream + headroom; safe on v7x's 64 MiB VMEM.
    vmem_limit = int(min(100 * 2 ** 20, max(16 * 2 ** 20,
                                            4 * tile_bytes + 8 * 2 ** 20)))

    partials = pl.pallas_call(
        functools.partial(_dpsh_partial_kernel, B=B, num_train=num_train,
                          tile_n=tile_n, chunk=chunk, mask_tail=mask_tail),
        out_shape=jax.ShapeDtypeStruct((n_tiles, B, 128), jnp.float32),
        grid_spec=pltpu.PrefetchScalarGridSpec(
            num_scalar_prefetch=0,
            grid=(n_tiles,),
            in_specs=[
                pl.BlockSpec((2 * B, K), lambda j: (0, 0)),       # tiny LHS
                pl.BlockSpec((K, tile_n), lambda j: (0, j)),      # state stream
            ],
            out_specs=pl.BlockSpec((1, B, 128), lambda j: (j, 0, 0)),
        ),
        compiler_params=pltpu.CompilerParams(
            dimension_semantics=("parallel",),
            vmem_limit_bytes=vmem_limit),
        cost_estimate=cost,
    )(lhs, W_t)

    # Tiny epilogue (O(n_tiles*B*128) + O(B*bit)) in plain JAX.
    likelihood = jnp.sum(partials) / jnp.float32(B * num_train)
    quant = jnp.float32(alpha) * jnp.mean((u - jnp.sign(u)) ** 2)
    return likelihood + quant, W_t


def dpsh_loss_ref(u, y, ind, U, Y, *, alpha):
    """Plain-JAX mirror of DPSHLoss.forward (original (num_train, feat) layout)."""
    u = u.astype(jnp.float32)
    yf = y.astype(jnp.float32)
    U = U.at[ind, :].set(u)
    Y = Y.at[ind, :].set(yf)
    s = (yf @ Y.T > 0).astype(jnp.float32)
    ip = u @ U.T * 0.5
    ll = jnp.log1p(jnp.exp(-jnp.abs(ip))) + jnp.maximum(ip, 0.0) - s * ip
    like = jnp.mean(ll)
    quant = alpha * jnp.mean((u - jnp.sign(u)) ** 2)
    return like + quant, U, Y


if __name__ == "__main__":
    # config: num_train=256, bit=32, n_class=16, alpha=0.1; batch B=8
    num_train, bit, n_class, B = 256, 32, 16, 8
    alpha = 0.1

    key = jax.random.PRNGKey(0)
    ku, ky, ki = jax.random.split(key, 3)

    u = jax.random.normal(ku, (B, bit), dtype=jnp.float32)
    labels = jax.random.randint(ky, (B,), 0, n_class)
    y = jax.nn.one_hot(labels, n_class, dtype=jnp.float32)
    ind = jax.random.permutation(ki, num_train)[:B]

    # reference in the original (num_train, feat) layout
    loss_ref, U_ref, Y_ref = dpsh_loss_ref(
        u, y, ind, jnp.zeros((num_train, bit), jnp.float32),
        jnp.zeros((num_train, n_class), jnp.float32), alpha=alpha)
    loss_ref = jax.block_until_ready(loss_ref)

    # 1) float32 state, default tiling (>= 2 "parallel" tiles) -> exact
    W0 = init_dpsh_state(num_train, bit, n_class, jnp.float32)
    loss1, W1 = dpsh_loss(u, y, ind, W0, alpha=alpha)
    loss1 = jax.block_until_ready(loss1)
    assert jnp.allclose(loss1, loss_ref, rtol=1e-5, atol=1e-5), (loss1, loss_ref)
    assert jnp.allclose(W1[:bit].T, U_ref) and jnp.allclose(W1[bit:].T, Y_ref)

    # 2) bfloat16 state (the default dtype): half the dominant-stream bytes
    Wb = init_dpsh_state(num_train, bit, n_class)           # bf16
    loss2, _ = dpsh_loss(u, y, ind, Wb, alpha=alpha)
    loss2 = jax.block_until_ready(loss2)
    assert jnp.allclose(loss2, loss_ref, rtol=2e-2, atol=2e-2), (loss2, loss_ref)

    # 3) num_train not a multiple of 128 -> exercises the tail-mask path
    nt2 = 300
    ind2 = jax.random.permutation(ki, nt2)[:B]
    loss_ref2, _, _ = dpsh_loss_ref(
        u, y, ind2, jnp.zeros((nt2, bit), jnp.float32),
        jnp.zeros((nt2, n_class), jnp.float32), alpha=alpha)
    W02 = init_dpsh_state(nt2, bit, n_class, jnp.float32)
    loss3, _ = dpsh_loss(u, y, ind2, W02, alpha=alpha)
    loss3 = jax.block_until_ready(loss3)
    assert jnp.allclose(loss3, loss_ref2, rtol=1e-5, atol=1e-5), (loss3, loss_ref2)

    # 4) larger num_train -> multi-tile grid AND multi-chunk inner loop
    nt3 = 16384
    ind3 = jax.random.permutation(ki, nt3)[:B]
    loss_ref3, _, _ = dpsh_loss_ref(
        u, y, ind3, jnp.zeros((nt3, bit), jnp.float32),
        jnp.zeros((nt3, n_class), jnp.float32), alpha=alpha)
    W03 = init_dpsh_state(nt3, bit, n_class, jnp.float32)
    loss4, _ = dpsh_loss(u, y, ind3, W03, alpha=alpha)
    loss4 = jax.block_until_ready(loss4)
    assert jnp.allclose(loss4, loss_ref3, rtol=1e-4, atol=1e-4), (loss4, loss_ref3)

    print("KERNEL_OK")
</pallas_src>

<mosaic_0001>
module attributes {stable_mosaic.version = 11 : i64} {
  func.func @_dpsh_partial_kernel(%arg0: i32, %arg1: memref<16x48xf32, #tpu.memory_space<vmem>>, %arg2: memref<48x128xf32, #tpu.memory_space<vmem>>, %arg3: memref<1x8x128xf32, #tpu.memory_space<vmem>>) attributes {dimension_semantics = [#tpu.dimension_semantics<parallel>], iteration_bounds = array<i64: 2>, scalar_prefetch = 0 : i64, scratch_operands = 0 : i64, tpu.core_type = #tpu.core_type<tc>, window_params = [{pipeline_mode = #tpu.pipeline_mode<synchronous>, transform_indices = @transform_0, window_bounds = array<i64: 16, 48>}, {transform_indices = @transform_1, window_bounds = array<i64: 48, 128>}, {transform_indices = @transform_2, window_bounds = array<i64: 1, 8, 128>}]} {
    %c0 = arith.constant 0 : index
    %c0_0 = arith.constant 0 : index
    %0 = vector.load %arg1[%c0, %c0_0] : memref<16x48xf32, #tpu.memory_space<vmem>>, vector<16x48xf32>
    %c0_1 = arith.constant 0 : index
    %c0_2 = arith.constant 0 : index
    %1 = vector.load %arg2[%c0_1, %c0_2] : memref<48x128xf32, #tpu.memory_space<vmem>>, vector<48x128xf32>
    %cst = arith.constant dense<0.000000e+00> : vector<16x128xf32>
    %2 = tpu.matmul %0, %1, %cst {dimension_numbers = #tpu.dot_dimension_numbers<[1], [0], [0], [1], [0, 0, 1, 1], [], []>} : vector<16x48xf32>, vector<48x128xf32>, vector<16x128xf32> -> vector<16x128xf32>
    %3 = vector.extract_strided_slice %2 {offsets = [0, 0], sizes = [8, 128], strides = [1, 1]} : vector<16x128xf32> to vector<8x128xf32>
    %4 = vector.extract_strided_slice %2 {offsets = [8, 0], sizes = [8, 128], strides = [1, 1]} : vector<16x128xf32> to vector<8x128xf32>
    %cst_3 = arith.constant 0.000000e+00 : f32
    %5 = vector.broadcast %cst_3 : f32 to vector<8x128xf32>
    %6 = arith.cmpf ogt, %4, %5 : vector<8x128xf32>
    %7 = arith.extui %6 : vector<8x128xi1> to vector<8x128xi32>
    %8 = arith.sitofp %7 : vector<8x128xi32> to vector<8x128xf32>
    %9 = math.absf %3 : vector<8x128xf32>
    %cst_4 = arith.constant 0.000000e+00 : f32
    %10 = vector.broadcast %cst_4 : f32 to vector<8x128xf32>
    %11 = arith.subf %10, %9 : vector<8x128xf32>
    %12 = math.exp %11 : vector<8x128xf32>
    %13 = math.log1p %12 : vector<8x128xf32>
    %cst_5 = arith.constant 0.000000e+00 : f32
    %14 = vector.broadcast %cst_5 : f32 to vector<8x128xf32>
    %15 = arith.maximumf %3, %14 : vector<8x128xf32>
    %16 = arith.addf %13, %15 : vector<8x128xf32>
    %17 = arith.mulf %8, %3 : vector<8x128xf32>
    %18 = arith.subf %16, %17 : vector<8x128xf32>
    %19 = vector.shape_cast %18 : vector<8x128xf32> to vector<1x8x128xf32>
    %c0_6 = arith.constant 0 : index
    %c0_7 = arith.constant 0 : index
    %c0_8 = arith.constant 0 : index
    %20 = vector.load %arg3[%c0_6, %c0_7, %c0_8] : memref<1x8x128xf32, #tpu.memory_space<vmem>>, vector<1x8x128xf32>
    tpu.vector_store %arg3[%c0_6, %c0_7, %c0_8], %19 {strides = array<i32>} : memref<1x8x128xf32, #tpu.memory_space<vmem>>, vector<1x8x128xf32>,
    return
  }
  func.func @transform_0(%arg0: i32) -> (i32, i32) {
    %c0_i32 = arith.constant 0 : i32
    %c0_i32_0 = arith.constant 0 : i32
    %c0_i32_1 = arith.constant 0 : i32
    return %c0_i32, %c0_i32_0 : i32, i32
  }
  func.func @transform_1(%arg0: i32) -> (i32, i32) {
    %c0_i32 = arith.constant 0 : i32
    %c0_i32_0 = arith.constant 0 : i32
    return %c0_i32, %arg0 : i32, i32
  }
  func.func @transform_2(%arg0: i32) -> (i32, i32, i32) {
    %c0_i32 = arith.constant 0 : i32
    %c0_i32_0 = arith.constant 0 : i32
    %c0_i32_1 = arith.constant 0 : i32
    return %arg0, %c0_i32, %c0_i32_0 : i32, i32, i32
  }
}

</mosaic_0001>

<bundles_post_ra>
// kernel: dpsh_loss.1
= control target key start
LH: loop header
LB: loop body
LE: loop exit
PB: predicated region body
PF: predicated region fallthrough
CT: control target
= control target key end

     0   :  { %s404_s9 = smov 0   ;;  %s406_s10 = smov 0   ;;  %s464_s0 = inlined_call_operand.vmem [shape: f32[16,48], index: 0, kind: input, shape index: {}]   ;;  %s465_s1 = inlined_call_operand.vmem [shape: f32[48,256], index: 1, kind: input, shape index: {}]   ;;  %s466_s2 = inlined_call_operand.vmem [shape: f32[2,8,128], index: 2, kind: output, shape index: {}]  }
   0x1   :  { %s408_s11 = smov 0  }
   0x2 LB: > { %s315_s12 = sadd.s32 4294967295, %s386_s11   ;;  %s421_s13 = sadd.s32 1, %s386_s11   ;;  %s386_s11 = sphi %s408_s11, %s469_s11   ;;  %s382_s10 = sphi %s406_s10, %s468_s10   ;;  %s378_s9 = sphi %s404_s9, %s467_s9  }
   0x3   : > { %s37_s14 = ssub.s32 %s386_s11, %s421_s13  ;;  %s40_s15 = sadd.s32 1, %s382_s10 }
   0x4   : > { %p38_p0 = scmp.eq.s32.totalorder %s37_s14, 0  ;;  %p47_p1 = scmp.ne.s32.totalorder %s382_s10, %s378_s9 }
   0x5   : > { %p48_p2 = scmp.eq.s32.totalorder %s386_s11, 0  ;;  %p318_p4 = scmp.ge.s32.totalorder %s386_s11, 2 }
   0x6   : > { %s430_s16 = scalar_select %p38_p0, %s382_s10, %s40_s15  }
   0x7   : > { %p49_p3 = por %p48_p2, %p47_p1  ;;  %102 = sbr.rel (%p318_p4) target bundleno = 22 (0x16), region = 20 }
   0xc   : > { %105 = sbr.rel (!%p49_p3) target bundleno = 22 (0x16), region = 24  ;;  %s107_s17 = sand.u32 (%p49_p3), 1, %s382_s10  }
   0xd   : > { %s319_s18 = sshll.u32 (%p49_p3), %s386_s11, 3  ;;  %s333_s19 = smul.u32 (%p49_p3), 48, %s107_s17 }
   0xe   : > { %s111_s22 = scalar_lea.vmem (%p49_p3), %s465_s1, %s319_s18 }
   0xf   : > { %v150_v0 = vld [vmem:[%s111_s22] sm:$0xff] (%p49_p3)  ;;  %v152_v1 = vld [vmem:[%s111_s22 + $0x10] sm:$0xff] (%p49_p3)  ;;  %s109_s23 = scalar_lea.vmem (%p49_p3), [#allocation2], %s333_s19 }
  0x10   : > { %v154_v2 = vld [vmem:[%s111_s22 + $0x20] sm:$0xff] (%p49_p3)  ;;  %151 = vst [vmem:[%s109_s23] sm:$0xff] (%p49_p3), %v150_v0  ;;  %v156_v3 = vld [vmem:[%s111_s22 + $0x30] sm:$0xff] (%p49_p3) }
  0x11   : > { %153 = vst [vmem:[%s109_s23 + $0x8] sm:$0xff] %v152_v1  ;;  %v158_v4 = vld [vmem:[%s111_s22 + $0x40] sm:$0xff]  ;;  %v160_v5 = vld [vmem:[%s111_s22 + $0x50] sm:$0xff] }
  0x12   : > { %155 = vst [vmem:[%s109_s23 + $0x10] sm:$0xff] %v154_v2 }
  0x13   : > { %157 = vst [vmem:[%s109_s23 + $0x18] sm:$0xff] %v156_v3 }
  0x14   : > { %159 = vst [vmem:[%s109_s23 + $0x20] sm:$0xff] %v158_v4 }
  0x15   : > { %161 = vst [vmem:[%s109_s23 + $0x28] sm:$0xff] %v160_v5 }
  0x16 PF: > { %p320_p5 = scmp.ge.s32.totalorder %s386_s11, 1  ;;  %p166_p6 = scmp.lt.s32.totalorder %s386_s11, 3 }
  0x18   : > { %p167_p7 = pnand %p320_p5, %p166_p6 }
  0x19   : > { %s173_s24 = sand.u32 (!%p167_p7), 1, %s378_s9   ;;  %p193_p8 = scmp.lt.s32.totalorder (!%p167_p7), %s315_s12, 1 }
  0x1a   : > { %170 = sbr.rel (%p167_p7) target bundleno = 199 (0xc7), region = 62 }
  0x1b   : > { %s334_s25 = smul.u32 (!%p167_p7), 48, %s173_s24 }
  0x1d   : > { %s175_s26 = scalar_lea.vmem (!%p167_p7), [#allocation2], %s334_s25 }
  0x1f   : > { %v204_v6 = vld [vmem:[%s175_s26 + $0x28] sm:$0xff]  ;;  %v203_v7 = vld [vmem:[%s175_s26 + $0x20] sm:$0xff]  ;;  %v202_v8 = vld [vmem:[%s175_s26 + $0x18] sm:$0xff]  ;;  %vm205_vm0 = vcmask 392192   ;;  %s471_s12 = smov (!%p193_p8, %s315_s12), 1  ;;  %v388_v27 = vmov 0.0  }
  0x20   : > { %222 = vmatpush.msra.mxu0 %v204_v6  ;;  %327 = vmatpush.msra.mxu1 %v204_v6  ;;  %v201_v9 = vld [vmem:[%s175_s26 + $0x10] sm:$0xff]  ;;  %v200_v10 = vld [vmem:[%s175_s26 + $0x8] sm:$0xff]  ;;  %v199_v11 = vld [vmem:[%s175_s26] sm:$0xff]  ;;  %s321_s3 = sshll.u32 %s471_s12, 3 }
  0x21   : > { %v197_v12 = vld [vmem:[%s464_s0] sm:$0xff]  ;;  %v198_v13 = vld [vmem:[%s464_s0 + $0x8] sm:$0xff]  ;;  %s196_s6 = scalar_lea.vmem %s466_s2, %s321_s3 }
  0x22   : > { %223 = vmatpush.msra.mxu0 %v203_v7  ;;  %328 = vmatpush.msra.mxu1 %v203_v7 }
  0x24   : > { %224 = vmatpush.msra.mxu0 %v202_v8  ;;  %329 = vmatpush.msra.mxu1 %v202_v8 }
  0x26   : > { %225 = vmatpush.msra.mxu0 %v201_v9  ;;  %330 = vmatpush.msra.mxu1 %v201_v9 }
  0x28   : > { %226 = vmatpush.msra.mxu0 %v200_v10  ;;  %331 = vmatpush.msra.mxu1 %v200_v10 }
  0x2a   : > { %227 = vmatpush.msra.mxu0 %v199_v11  ;;  %332 = vmatpush.msra.mxu1 %v199_v11 }
  0x2b   : > { %322 = vmatmul.msk.f32.vlgmr.msra.gmra.mxu0 %vm205_vm0, %v197_v12  ;;  %323 = vmatmul.msk.f32.vlgmr.msra.gmra.mxu1 %vm205_vm0, %v198_v13 }
  0xa8   : > { %v229_v14 = vpop.f32.mrf.mxu0  ;;  %v232_v21 = vpop.f32.mrf.mxu1 }
  0xa9   : > { %v238_v15 = vand.u32 2147483647, %v229_v14  ;;  %vm235_vm1 = vcmp.gt.f32.partialorder %v232_v21, 0.0  ;;  %v251_v29 = vmax.f32 %v229_v14, 0.0 }
  0xaa   : > { %v324_v28 = vsel %vm235_vm1, 1.0, %v388_v27 }
  0xab   : > { %v239_v16 = vsub.f32 0.0, %v238_v15  ;;  %v253_v32 = vmul.f32 %v324_v28, %v229_v14 }
  0xad   : > { %v240_v17 = vmul.f32 1.442695, %v239_v16 }
  0xaf   : > { %360 = vpow2.f32 %v240_v17 }
  0xb5   : > { %v361_v18 = vpop.eup %360 }
  0xb6   : > { %v242_v19 = vadd.f32 1.0, %v361_v18  ;;  %v245_v20 = vmul.f32 -0.5, %v361_v18  ;;  %v248_v23 = vand.u32 2147483647, %v361_v18 }
  0xb8   : > { %362 = vlog2.f32 %v242_v19  ;;  %v246_v22 = vadd.f32 1.0, %v245_v20  ;;  %vm249_vm2 = vcmp.lt.f32.partialorder %v248_v23, 0.0004427343 }
  0xba   : > { %v247_v26 = vmul.f32 %v361_v18, %v246_v22 }
  0xbe   : > { %v363_v24 = vpop.eup %362 }
  0xbf   : > { %v244_v25 = vmul.f32 0.6931472, %v363_v24 }
  0xc1   : > { %v250_v30 = vsel %vm249_vm2, %v247_v26, %v244_v25 }
  0xc2   : > { %v252_v31 = vadd.f32 %v251_v29, %v250_v30 }
  0xc4   : > { %v254_v33 = vsub.f32 %v252_v31, %v253_v32 }
  0xc6   : > { %255 = vst [vmem:[%s196_s6] sm:$0xff] %v254_v33 }
  0xc7 PF: > { %p9_p9 = scmp.ge.s32.totalorder %s421_s13, 4   ;;  %s467_s9 = smov %s382_s10 }
  0xc8   : > { %s468_s10 = smov %s430_s16  ;;  %s469_s11 = smov %s421_s13 }
  0xc9   :  { %11 = sbr.rel (!%p9_p9) target bundleno = 2 (0x2), region = 101 }

</bundles_post_ra>
